<compile_context>
chip_gen: v5e
topology: v5e:2x2
jax: 0.10.0
libtpu: 0.0.40
codegen_flags: <defaults>
</compile_context>

<pallas_src>
import numpy as np
import jax
import jax.numpy as jnp
from jax.experimental import pallas as pl
from jax.experimental.pallas import tpu as pltpu

BATCH = 2
SEQ = 8
VOCAB = 128   # multiple of 128 -> lane-dense weight rows
EMBED = 128   # multiple of 128 -> lane-dense output stores


def embedding_kernel(idx_ref, w_ref, out_ref):
    """idx_ref: (N,) int32 in SMEM (scalar-prefetched),
       w_ref:   (V, E) weight tile in VMEM,
       out_ref: (TILE, E) output tile in VMEM."""
    tile = out_ref.shape[0]
    vocab = w_ref.shape[0]
    base = pl.program_id(0) * tile
    # Direct row gather: a copy, not a contraction.  Static (unrolled) loop
    # over the tile; each iteration is one scalar SMEM read + one VMEM row copy.
    for i in range(tile):
        idx = jnp.clip(idx_ref[base + i], 0, vocab - 1)   # guard OOB reads
        out_ref[pl.ds(i, 1), :] = w_ref[pl.ds(idx, 1), :]


def embedding_lookup(indices, weight, *, token_tile=8):
    """Pallas equivalent of Embedding.forward: weight[indices]."""
    orig_shape = indices.shape
    n_tokens = int(np.prod(orig_shape))
    vocab, embed = weight.shape

    idx_flat = jnp.ravel(indices).astype(jnp.int32)
    n_tiles = pl.cdiv(n_tokens, token_tile)
    n_pad = n_tiles * token_tile
    if n_pad != n_tokens:
        idx_flat = jnp.pad(idx_flat, (0, n_pad - n_tokens))

    out = pl.pallas_call(
        embedding_kernel,
        out_shape=jax.ShapeDtypeStruct((n_pad, embed), weight.dtype),
        grid_spec=pltpu.PrefetchScalarGridSpec(
            num_scalar_prefetch=1,          # indices -> SMEM, passed first
            grid=(n_tiles,),
            in_specs=[
                # Weight resident in VMEM each step (toy size: 64 KiB).
                pl.BlockSpec((vocab, embed), lambda t, idx: (0, 0)),
            ],
            out_specs=pl.BlockSpec((token_tile, embed), lambda t, idx: (t, 0)),
        ),
        compiler_params=pltpu.CompilerParams(
            dimension_semantics=("parallel",),   # v7x: 2 TCs split token tiles
        ),
    )(idx_flat, weight)
    return out[:n_tokens].reshape(*orig_shape, embed)


# ---- pure-JAX reference (what the PyTorch one-hot einsum computes) ----
def reference(indices, weight):
    return jnp.take(weight, indices, axis=0)


if __name__ == "__main__":
    key = jax.random.PRNGKey(0)
    k_idx, k_w = jax.random.split(key)
    indices = jax.random.randint(k_idx, (BATCH, SEQ), 0, VOCAB, dtype=jnp.int32)
    # weight ~ N(0, 1), matching torch.randn initialization in the module.
    weight = jax.random.normal(k_w, (VOCAB, EMBED), dtype=jnp.float32)

    out = jax.block_until_ready(embedding_lookup(indices, weight))

    ref = reference(indices, weight)
    # Pure row copy -> bit-exact.
    np.testing.assert_allclose(np.asarray(out), np.asarray(ref), atol=0, rtol=0)
    assert out.shape == (BATCH, SEQ, EMBED)
    print("KERNEL_OK")
</pallas_src>

<mosaic_0001>
module attributes {stable_mosaic.version = 11 : i64} {
  func.func @embedding_kernel(%arg0: i32, %arg1: memref<16xi32, #tpu.memory_space<smem>>, %arg2: memref<128x128xf32, #tpu.memory_space<vmem>>, %arg3: memref<8x128xf32, #tpu.memory_space<vmem>>) attributes {dimension_semantics = [#tpu.dimension_semantics<parallel>], iteration_bounds = array<i64: 2>, scalar_prefetch = 1 : i64, scratch_operands = 0 : i64, tpu.core_type = #tpu.core_type<tc>, window_params = [{pipeline_mode = #tpu.pipeline_mode<synchronous>, transform_indices = @transform_0, window_bounds = array<i64: 128, 128>}, {transform_indices = @transform_1, window_bounds = array<i64: 8, 128>}]} {
    %c8_i32 = arith.constant 8 : i32
    %0 = arith.muli %arg0, %c8_i32 : i32
    %c0_i32 = arith.constant 0 : i32
    %1 = arith.addi %0, %c0_i32 : i32
    %2 = arith.index_cast %1 : i32 to index
    %3 = memref.load %arg1[%2] : memref<16xi32, #tpu.memory_space<smem>>
    %c0_i32_0 = arith.constant 0 : i32
    %c127_i32 = arith.constant 127 : i32
    %4 = arith.maxsi %c0_i32_0, %3 : i32
    %5 = arith.minsi %c127_i32, %4 : i32
    %6 = arith.index_cast %5 : i32 to index
    %c0 = arith.constant 0 : index
    %7 = vector.load %arg2[%6, %c0] : memref<128x128xf32, #tpu.memory_space<vmem>>, vector<1x128xf32>
    %c0_1 = arith.constant 0 : index
    %c0_2 = arith.constant 0 : index
    %8 = vector.load %arg3[%c0_1, %c0_2] : memref<8x128xf32, #tpu.memory_space<vmem>>, vector<1x128xf32>
    tpu.vector_store %arg3[%c0_1, %c0_2], %7 {strides = array<i32>} : memref<8x128xf32, #tpu.memory_space<vmem>>, vector<1x128xf32>,
    %c1_i32 = arith.constant 1 : i32
    %9 = arith.addi %0, %c1_i32 : i32
    %10 = arith.index_cast %9 : i32 to index
    %11 = memref.load %arg1[%10] : memref<16xi32, #tpu.memory_space<smem>>
    %c0_i32_3 = arith.constant 0 : i32
    %c127_i32_4 = arith.constant 127 : i32
    %12 = arith.maxsi %c0_i32_3, %11 : i32
    %13 = arith.minsi %c127_i32_4, %12 : i32
    %14 = arith.index_cast %13 : i32 to index
    %c0_5 = arith.constant 0 : index
    %15 = vector.load %arg2[%14, %c0_5] : memref<128x128xf32, #tpu.memory_space<vmem>>, vector<1x128xf32>
    %c1 = arith.constant 1 : index
    %c0_6 = arith.constant 0 : index
    %16 = vector.load %arg3[%c1, %c0_6] : memref<8x128xf32, #tpu.memory_space<vmem>>, vector<1x128xf32>
    tpu.vector_store %arg3[%c1, %c0_6], %15 {strides = array<i32>} : memref<8x128xf32, #tpu.memory_space<vmem>>, vector<1x128xf32>,
    %c2_i32 = arith.constant 2 : i32
    %17 = arith.addi %0, %c2_i32 : i32
    %18 = arith.index_cast %17 : i32 to index
    %19 = memref.load %arg1[%18] : memref<16xi32, #tpu.memory_space<smem>>
    %c0_i32_7 = arith.constant 0 : i32
    %c127_i32_8 = arith.constant 127 : i32
    %20 = arith.maxsi %c0_i32_7, %19 : i32
    %21 = arith.minsi %c127_i32_8, %20 : i32
    %22 = arith.index_cast %21 : i32 to index
    %c0_9 = arith.constant 0 : index
    %23 = vector.load %arg2[%22, %c0_9] : memref<128x128xf32, #tpu.memory_space<vmem>>, vector<1x128xf32>
    %c2 = arith.constant 2 : index
    %c0_10 = arith.constant 0 : index
    %24 = vector.load %arg3[%c2, %c0_10] : memref<8x128xf32, #tpu.memory_space<vmem>>, vector<1x128xf32>
    tpu.vector_store %arg3[%c2, %c0_10], %23 {strides = array<i32>} : memref<8x128xf32, #tpu.memory_space<vmem>>, vector<1x128xf32>,
    %c3_i32 = arith.constant 3 : i32
    %25 = arith.addi %0, %c3_i32 : i32
    %26 = arith.index_cast %25 : i32 to index
    %27 = memref.load %arg1[%26] : memref<16xi32, #tpu.memory_space<smem>>
    %c0_i32_11 = arith.constant 0 : i32
    %c127_i32_12 = arith.constant 127 : i32
    %28 = arith.maxsi %c0_i32_11, %27 : i32
    %29 = arith.minsi %c127_i32_12, %28 : i32
    %30 = arith.index_cast %29 : i32 to index
    %c0_13 = arith.constant 0 : index
    %31 = vector.load %arg2[%30, %c0_13] : memref<128x128xf32, #tpu.memory_space<vmem>>, vector<1x128xf32>
    %c3 = arith.constant 3 : index
    %c0_14 = arith.constant 0 : index
    %32 = vector.load %arg3[%c3, %c0_14] : memref<8x128xf32, #tpu.memory_space<vmem>>, vector<1x128xf32>
    tpu.vector_store %arg3[%c3, %c0_14], %31 {strides = array<i32>} : memref<8x128xf32, #tpu.memory_space<vmem>>, vector<1x128xf32>,
    %c4_i32 = arith.constant 4 : i32
    %33 = arith.addi %0, %c4_i32 : i32
    %34 = arith.index_cast %33 : i32 to index
    %35 = memref.load %arg1[%34] : memref<16xi32, #tpu.memory_space<smem>>
    %c0_i32_15 = arith.constant 0 : i32
    %c127_i32_16 = arith.constant 127 : i32
    %36 = arith.maxsi %c0_i32_15, %35 : i32
    %37 = arith.minsi %c127_i32_16, %36 : i32
    %38 = arith.index_cast %37 : i32 to index
    %c0_17 = arith.constant 0 : index
    %39 = vector.load %arg2[%38, %c0_17] : memref<128x128xf32, #tpu.memory_space<vmem>>, vector<1x128xf32>
    %c4 = arith.constant 4 : index
    %c0_18 = arith.constant 0 : index
    %40 = vector.load %arg3[%c4, %c0_18] : memref<8x128xf32, #tpu.memory_space<vmem>>, vector<1x128xf32>
    tpu.vector_store %arg3[%c4, %c0_18], %39 {strides = array<i32>} : memref<8x128xf32, #tpu.memory_space<vmem>>, vector<1x128xf32>,
    %c5_i32 = arith.constant 5 : i32
    %41 = arith.addi %0, %c5_i32 : i32
    %42 = arith.index_cast %41 : i32 to index
    %43 = memref.load %arg1[%42] : memref<16xi32, #tpu.memory_space<smem>>
    %c0_i32_19 = arith.constant 0 : i32
    %c127_i32_20 = arith.constant 127 : i32
    %44 = arith.maxsi %c0_i32_19, %43 : i32
    %45 = arith.minsi %c127_i32_20, %44 : i32
    %46 = arith.index_cast %45 : i32 to index
    %c0_21 = arith.constant 0 : index
    %47 = vector.load %arg2[%46, %c0_21] : memref<128x128xf32, #tpu.memory_space<vmem>>, vector<1x128xf32>
    %c5 = arith.constant 5 : index
    %c0_22 = arith.constant 0 : index
    %48 = vector.load %arg3[%c5, %c0_22] : memref<8x128xf32, #tpu.memory_space<vmem>>, vector<1x128xf32>
    tpu.vector_store %arg3[%c5, %c0_22], %47 {strides = array<i32>} : memref<8x128xf32, #tpu.memory_space<vmem>>, vector<1x128xf32>,
    %c6_i32 = arith.constant 6 : i32
    %49 = arith.addi %0, %c6_i32 : i32
    %50 = arith.index_cast %49 : i32 to index
    %51 = memref.load %arg1[%50] : memref<16xi32, #tpu.memory_space<smem>>
    %c0_i32_23 = arith.constant 0 : i32
    %c127_i32_24 = arith.constant 127 : i32
    %52 = arith.maxsi %c0_i32_23, %51 : i32
    %53 = arith.minsi %c127_i32_24, %52 : i32
    %54 = arith.index_cast %53 : i32 to index
    %c0_25 = arith.constant 0 : index
    %55 = vector.load %arg2[%54, %c0_25] : memref<128x128xf32, #tpu.memory_space<vmem>>, vector<1x128xf32>
    %c6 = arith.constant 6 : index
    %c0_26 = arith.constant 0 : index
    %56 = vector.load %arg3[%c6, %c0_26] : memref<8x128xf32, #tpu.memory_space<vmem>>, vector<1x128xf32>
    tpu.vector_store %arg3[%c6, %c0_26], %55 {strides = array<i32>} : memref<8x128xf32, #tpu.memory_space<vmem>>, vector<1x128xf32>,
    %c7_i32 = arith.constant 7 : i32
    %57 = arith.addi %0, %c7_i32 : i32
    %58 = arith.index_cast %57 : i32 to index
    %59 = memref.load %arg1[%58] : memref<16xi32, #tpu.memory_space<smem>>
    %c0_i32_27 = arith.constant 0 : i32
    %c127_i32_28 = arith.constant 127 : i32
    %60 = arith.maxsi %c0_i32_27, %59 : i32
    %61 = arith.minsi %c127_i32_28, %60 : i32
    %62 = arith.index_cast %61 : i32 to index
    %c0_29 = arith.constant 0 : index
    %63 = vector.load %arg2[%62, %c0_29] : memref<128x128xf32, #tpu.memory_space<vmem>>, vector<1x128xf32>
    %c7 = arith.constant 7 : index
    %c0_30 = arith.constant 0 : index
    %64 = vector.load %arg3[%c7, %c0_30] : memref<8x128xf32, #tpu.memory_space<vmem>>, vector<1x128xf32>
    tpu.vector_store %arg3[%c7, %c0_30], %63 {strides = array<i32>} : memref<8x128xf32, #tpu.memory_space<vmem>>, vector<1x128xf32>,
    return
  }
  func.func @transform_0(%arg0: i32, %arg1: memref<16xi32, #tpu.memory_space<smem>>) -> (i32, i32) {
    %c0_i32 = arith.constant 0 : i32
    %c0_i32_0 = arith.constant 0 : i32
    %c0_i32_1 = arith.constant 0 : i32
    return %c0_i32, %c0_i32_0 : i32, i32
  }
  func.func @transform_1(%arg0: i32, %arg1: memref<16xi32, #tpu.memory_space<smem>>) -> (i32, i32) {
    %c0_i32 = arith.constant 0 : i32
    %c0_i32_0 = arith.constant 0 : i32
    return %arg0, %c0_i32 : i32, i32
  }
}

</mosaic_0001>

<bundles_post_ra>
// kernel: tpu_custom_call.1
= control target key start
LH: loop header
LB: loop body
LE: loop exit
PB: predicated region body
PF: predicated region fallthrough
CT: control target
= control target key end

     0   :  { %s508_s12 = smov [#allocation3]   ;;  %s660_s0 = inlined_call_operand.hbm [shape: s32[16], index: 0, kind: input, shape index: {}]   ;;  %s661_s1 = inlined_call_operand.hbm [shape: f32[128,128], index: 1, kind: input, shape index: {}]   ;;  %s662_s2 = inlined_call_operand.hbm [shape: f32[16,128], index: 2, kind: output, shape index: {}]  }
   0x1   :  { %s8_s11 = sshll.u32 %s660_s0, 4  ;;  %s9_s11 = int_to_ptr.hbm [resolvable:$true] %s8_s11 }
   0x2   :  { %11 = dma.hbm_to_smem %s9_s11, 16, %s508_s12, [#allocation2] }
   0x3   :  { %482 = dma.done.wait [#allocation2], 16 }
   0x4   :  { %483 = vsyncadd [#allocation2], 4294967280 }
   0x5   :  { %14 = sfence }
   0x6   :  { %15 = vsyncpa [#allocation5], 0 }
   0x7   :  { %16 = vsyncpa [#allocation6], 0 }
   0x8   :  { %18 = vsyncpa [#allocation6 + $0x1], 0  ;;  %s530_s13 = smov 0   ;;  %s532_s14 = smov 0  }
   0x9   :  { %s534_s15 = smov 0   ;;  %s536_s16 = smov 0  }
   0xa LB: > { %s551_s0 = sadd.s32 4294967295, %s506_s16   ;;  %s276_s17 = sadd.s32 4294967294, %s506_s16   ;;  %s506_s16 = sphi %s536_s16, %s668_s16   ;;  %s502_s15 = sphi %s534_s15, %s667_s15   ;;  %s498_s14 = sphi %s532_s14, %s666_s14   ;;  %s494_s13 = sphi %s530_s13, %s665_s13  }
   0xb   : > { %s555_s18 = sadd.s32 1, %s506_s16   ;;  %s52_s19 = sadd.s32 1, %s502_s15 }
   0xc   : > { %s49_s20 = ssub.s32 %s506_s16, %s555_s18  ;;  %p62_p0 = scmp.ne.s32.totalorder %s502_s15, %s498_s14 }
   0xd   : > { %p50_p1 = scmp.eq.s32.totalorder %s49_s20, 0  ;;  %p63_p2 = scmp.eq.s32.totalorder %s551_s0, 1 }
   0xe   : > { %p68_p3 = scmp.ne.s32.totalorder %s498_s14, %s494_s13  ;;  %p69_p4 = scmp.eq.s32.totalorder %s276_s17, 1 }
   0xf   : > { %s566_s21 = scalar_select %p50_p1, %s502_s15, %s52_s19  }
  0x10   : > { %p568_p5 = por %p63_p2, %p62_p0  ;;  %p572_p6 = por %p69_p4, %p68_p3 }
  0x11   : > { %p277_p7 = scmp.ge.s32.totalorder %s506_s16, 1  ;;  %p76_p8 = scmp.lt.s32.totalorder %s506_s16, 3 }
  0x12   : > { %p357_p9 = scmp.eq.s32.totalorder %s551_s0, 0  ;;  %s87_s26 = sshll.u32 %s661_s1, 4  ;;  %s88_s26 = int_to_ptr.hbm [resolvable:$true] %s87_s26 }
  0x13   : > { %p77_p10 = pnand %p277_p7, %p76_p8  ;;  %s509_s27 = smov [#allocation4]  }
  0x14   : > { %s89_s28 = sshll.u32 %s509_s27, 4  ;;  %s510_s29 = smov 128   ;;  %s90_s28 = int_to_ptr.vmem [resolvable:$true] %s89_s28 }
  0x15   : > { %p349_p11 = pneg %p77_p10  ;;  %s511_s30 = smov 8  }
  0x16   : > { %105 = sbr.rel (%p77_p10) target bundleno = 72 (0x48), region = 24 }
  0x17   : > { %p350_p12 = pnand %p357_p9, %p349_p11 }
  0x19   : > { %352 = dma.hbm_to_vmem [thread:$0]  (!%p350_p12), %s88_s26, 2048, %s90_s28, [#allocation5], %s510_s29, %s510_s29, %s511_s30  }
  0x1b   : > { %485 = dma.done.wait (%p357_p9), [#allocation5], 2048  }
  0x1c   : > { %487 = vsyncadd (%p357_p9), [#allocation5], 4294965248  ;;  %s118_s3 = sand.u32 1, %s498_s14   ;;  %s590_s4 = sshll.u32 %s551_s0, 3 }
  0x1d   : > { %s281_s5 = sshll.u32 %s118_s3, 3  ;;  %s122_s6 = sld [smem:[#allocation3 + %s590_s4]] }
  0x1e   : > { %s130_s7 = sadd.s32 1, %s590_s4  ;;  %s139_s8 = sadd.s32 2, %s590_s4 }
  0x1f   : > { %s131_s9 = sld [smem:[#allocation3 + %s130_s7]]  ;;  %s148_s10 = sadd.s32 3, %s590_s4 }
  0x20   : > { %s140_s11 = sld [smem:[#allocation3 + %s139_s8]]  ;;  %s157_s12 = sadd.s32 4, %s590_s4 }
  0x21   : > { %s599_s17 = sld [smem:[#allocation3 + %s148_s10]]  ;;  %s166_s0 = sadd.s32 5, %s590_s4 }
  0x22   : > { %s602_s19 = sld [smem:[#allocation3 + %s157_s12]]  ;;  %s175_s20 = sadd.s32 6, %s590_s4 }
  0x23   : > { %p123_p13 = scmp.gt.s32.totalorder %s122_s6, 0  ;;  %p283_p0 = scmp.lt.s32.totalorder %s122_s6, 127 }
  0x24   : > { %s605_s25 = scalar_lea.vmem [#allocation7], %s281_s5  ;;  %s167_s5 = sld [smem:[#allocation3 + %s166_s0]] }
  0x25   : > { %s670_s6 = smov (!%p123_p13, %s122_s6), 0  ;;  %p132_p1 = scmp.gt.s32.totalorder %s131_s9, 0 }
  0x26   : > { %p288_p2 = scmp.lt.s32.totalorder %s131_s9, 127  ;;  %s672_s6 = smov (!%p283_p0, %s670_s6), 127 }
  0x27   : > { %s674_s9 = smov (!%p132_p1, %s131_s9), 0  ;;  %p141_p3 = scmp.gt.s32.totalorder %s140_s11, 0 }
  0x28   : > { %s127_s24 = scalar_lea.vmem [#allocation4], %s672_s6  ;;  %s676_s9 = smov (!%p288_p2, %s674_s9), 127 }
  0x29   : > { %v128_v0 = vld [vmem:[%s127_s24] sm:$0x1]  ;;  %s142_s26 = scalar_select %p141_p3, %s140_s11, 0 }
  0x2a   : > { %129 = vst [vmem:[%s605_s25] sm:$0x1] %v128_v0  ;;  %p293_p4 = scmp.lt.s32.totalorder %s140_s11, 127  ;;  %s136_s27 = scalar_lea.vmem [#allocation4], %s676_s9 }
  0x2b   : > { %v137_v1 = vld [vmem:[%s136_s27] sm:$0x1]  ;;  %p150_p7 = scmp.gt.s32.totalorder %s599_s17, 0  ;;  %p298_p8 = scmp.lt.s32.totalorder %s599_s17, 127 }
  0x2c   : > { %138 = vst [vmem:[%s605_s25 + $0x1] sm:$0x1] %v137_v1  ;;  %s678_s26 = smov (!%p293_p4, %s142_s26), 127  ;;  %p159_p9 = scmp.gt.s32.totalorder %s602_s19, 0 }
  0x2d   : > { %s680_s17 = smov (!%p150_p7, %s599_s17), 0  ;;  %s145_s28 = scalar_lea.vmem [#allocation4], %s678_s26 }
  0x2e   : > { %v146_v2 = vld [vmem:[%s145_s28] sm:$0x1]  ;;  %s682_s17 = smov (!%p298_p8, %s680_s17), 127  ;;  %p303_p10 = scmp.lt.s32.totalorder %s602_s19, 127 }
  0x2f   : > { %147 = vst [vmem:[%s605_s25 + $0x2] sm:$0x1] %v146_v2  ;;  %s160_s29 = scalar_select %p159_p9, %s602_s19, 0 }
  0x30   : > { %s154_s30 = scalar_lea.vmem [#allocation4], %s682_s17  ;;  %s184_s6 = sadd.s32 7, %s590_s4 }
  0x31   : > { %v155_v3 = vld [vmem:[%s154_s30] sm:$0x1]  ;;  %s684_s29 = smov (!%p303_p10, %s160_s29), 127  ;;  %s176_s7 = sld [smem:[#allocation3 + %s175_s20]] }
  0x32   : > { %156 = vst [vmem:[%s605_s25 + $0x3] sm:$0x1] %v155_v3  ;;  %s163_s8 = scalar_lea.vmem [#allocation4], %s684_s29  ;;  %s185_s9 = sld [smem:[#allocation3 + %s184_s6]] }
  0x33   : > { %v164_v4 = vld [vmem:[%s163_s8] sm:$0x1]  ;;  %p168_p11 = scmp.gt.s32.totalorder %s167_s5, 0  ;;  %p308_p12 = scmp.lt.s32.totalorder %s167_s5, 127 }
  0x34   : > { %165 = vst [vmem:[%s605_s25 + $0x4] sm:$0x1] %v164_v4  ;;  %s204_s12 = scalar_lea.hbm %s662_s2, %s590_s4  ;;  %s206_s17 = sshll.u32 %s605_s25, 4  ;;  %s207_s17 = int_to_ptr.vmem [resolvable:$true] %s206_s17 }
  0x35   : > { %s686_s5 = smov (!%p168_p11, %s167_s5), 0  ;;  %s208_s4 = sshll.u32 %s204_s12, 4  ;;  %s209_s4 = int_to_ptr.hbm [resolvable:$true] %s208_s4 }
  0x36   : > { %s688_s5 = smov (!%p308_p12, %s686_s5), 127  ;;  %s194_s26 = scalar_lea.sflag [#allocation6], %s118_s3 }
  0x37   : > { %p177_p13 = scmp.gt.s32.totalorder %s176_s7, 0  ;;  %p313_p0 = scmp.lt.s32.totalorder %s176_s7, 127 }
  0x38   : > { %p186_p1 = scmp.gt.s32.totalorder %s185_s9, 0  ;;  %s172_s0 = scalar_lea.vmem [#allocation4], %s688_s5 }
  0x39   : > { %s690_s7 = smov (!%p177_p13, %s176_s7), 0  ;;  %v173_v5 = vld [vmem:[%s172_s0] sm:$0x1]  ;;  %p318_p2 = scmp.lt.s32.totalorder %s185_s9, 127 }
  0x3a   : > { %s692_s7 = smov (!%p313_p0, %s690_s7), 127  ;;  %174 = vst [vmem:[%s605_s25 + $0x5] sm:$0x1] %v173_v5  ;;  %s452_s27 = sshra.s32 %s209_s4, 4  ;;  %s453_s27 = int_to_ptr.hbm [resolvable:$true] %s452_s27 }
  0x3b   : > { %s187_s19 = scalar_select %p186_p1, %s185_s9, 0 }
  0x3c   : > { %s181_s20 = scalar_lea.vmem [#allocation4], %s692_s7  ;;  %s454_s28 = scalar_lea.hbm %s453_s27, 8 }
  0x3d   : > { %v182_v6 = vld [vmem:[%s181_s20] sm:$0x1]  ;;  %s694_s19 = smov (!%p318_p2, %s187_s19), 127  ;;  %p455_p3 = scmp.ne.s32.totalorder %s453_s27, %s454_s28 }
  0x3e   : > { %183 = vst [vmem:[%s605_s25 + $0x6] sm:$0x1] %v182_v6  ;;  %s190_s24 = scalar_lea.vmem [#allocation4], %s694_s19  ;;  %s458_s5 = scalar_lea.hbm %s662_s2, 16 }
  0x3f   : > { %v191_v7 = vld [vmem:[%s190_s24] sm:$0x1]  ;;  %p456_p4 = pnand %p455_p3, %p568_p5  ;;  %p459_p8 = scmp.lt.s32.totalorder %s453_s27, %s662_s2 }
  0x40   : > { %192 = vst [vmem:[%s605_s25 + $0x7] sm:$0x1] %v191_v7  ;;  %p460_p9 = scmp.lt.s32.totalorder %s458_s5, %s454_s28 }
  0x41   : > { %p457_p7 = pneg %p456_p4 }
  0x42   : > { %p461_p10 = por %p460_p9, %p459_p8 }
  0x44   : > { %p462_p11 = pnand %p461_p10, %p457_p7 }
  0x46   : > { %465 = shalt.err (!%p462_p11)
}
  0x47   : > { %347 = dma.vmem_to_hbm [thread:$0]  (%p568_p5), %s207_s17, 128, %s209_s4, %s194_s26  }
  0x48 PF: > { %p359_p12 = scmp.ge.s32.totalorder %s506_s16, 2  ;;  %s220_s3 = sand.u32 1, %s494_s13  }
  0x49   : > { %s221_s25 = scalar_lea.sflag [#allocation6], %s220_s3 }
  0x4a   : > { %p354_p13 = pnand %p359_p12, %p572_p6 }
  0x4c   : > { %p355_p0 = pneg %p354_p13 }
  0x4e   : > { %489 = dma.done.wait (%p355_p0), %s221_s25, 128  }
  0x4f   : > { %491 = vsyncadd (%p355_p0), %s221_s25, 4294967168  ;;  %p21_p1 = scmp.ge.s32.totalorder %s555_s18, 4   ;;  %s665_s13 = smov %s498_s14 }
  0x50   : > { %s666_s14 = smov %s502_s15  ;;  %s667_s15 = smov %s566_s21 }
  0x51   : > { %s668_s16 = smov %s555_s18  ;;  %23 = sbr.rel (!%p21_p1) target bundleno = 10 (0xa), region = 69 }
  0x56   :  { %227 = vsyncpa [#allocation5], 1 }
  0x57   :  { %229 = vsyncpa [#allocation5 + $0x1], 1 }
  0x58   :  { %230 = vsyncpa [#allocation6], 1 }
  0x59   :  { %232 = vsyncpa [#allocation6 + $0x1], 1 }

</bundles_post_ra>
